<compile_context>
chip_gen: v5e
topology: v5e:2x2
jax: 0.10.0
libtpu: 0.0.40
codegen_flags: <defaults>
</compile_context>

<pallas_src>
import jax
import jax.numpy as jnp
from jax.experimental import pallas as pl
from jax.experimental.pallas import tpu as pltpu


def _round_up(x, m):
    return (x + m - 1) // m * m


def _cdiv(a, b):
    return -(-a // b)


def ffn_kernel(x_ref, w1_ref, b1_ref, w2_ref, b2_ref, o_ref, acc_ref):
    h_idx = pl.program_id(1)

    @pl.when(h_idx == 0)
    def _():
        acc_ref[...] = jnp.zeros_like(acc_ref)

    # First matmul + bias + ReLU accumulated in f32 on the MXU; cast the ReLU
    # output back to the weight dtype so the second matmul feeds the MXU with
    # bf16 operands when the weights are bf16 (no-op for f32).
    h = jnp.dot(x_ref[...], w1_ref[...], preferred_element_type=jnp.float32)
    h = jnp.maximum(h + b1_ref[...], 0.0).astype(w2_ref.dtype)
    acc_ref[...] += jnp.dot(h, w2_ref[...], preferred_element_type=jnp.float32)

    @pl.when(h_idx == pl.num_programs(1) - 1)
    def _():
        # b2 is added exactly once, at finalize.
        o_ref[...] = (acc_ref[...] + b2_ref[...]).astype(o_ref.dtype)


def _select_tiles(M, D_pad, H_pad, x_dtype, w_dtype):
    """Per-generation tile sizes + VMEM budget."""
    bpe_x = jnp.dtype(x_dtype).itemsize
    bpe_w = jnp.dtype(w_dtype).itemsize
    sub = 16 if jnp.dtype(x_dtype) == jnp.bfloat16 else 8

    try:
        vmem_cap = int(pltpu.get_tpu_info().vmem_capacity_bytes)
    except Exception:
        vmem_cap = 64 << 20  # conservative (v7x-sized) if the query fails

    small_vmem = vmem_cap <= (80 << 20)      # v7x-class: 64 MiB VMEM, 2 TCs
    budget = int(vmem_cap * 0.80)            # leave headroom for the compiler

    # Roofline-motivated row-tile ceiling: ridge ~650 FLOP/byte on v6e needs
    # tile_m ~ 512-1024; ~310 on v7x needs ~512 (and 64 MiB forbids more);
    # v5e is MXU-bound already so the smaller result of the VMEM fit is fine.
    tile_m_cap = 512 if small_vmem else 1024

    # Hidden-dim tile: larger tile_h amortizes the f32 accumulator RMW (single
    # vst slot) and the ~0.35 us per-grid-step overhead.
    tile_h = 128
    for cand in ((512, 256) if small_vmem else (1024, 512, 256)):
        if H_pad % cand == 0:
            tile_h = cand
            break
    tile_h = min(tile_h, H_pad)

    def vmem_needed(tm, th):
        return (
            2 * (tm * D_pad * bpe_x            # x tile (double-buffered)
                 + tm * D_pad * bpe_x          # out tile
                 + D_pad * th * bpe_w          # w1 H-slice
                 + th * D_pad * bpe_w          # w2 H-slice
                 + (th + D_pad) * bpe_w)       # bias slices
            + tm * D_pad * 4                   # f32 accumulator scratch
        )

    def max_tm(th):
        fixed = 2 * (2 * D_pad * th * bpe_w + (th + D_pad) * bpe_w)
        per_row = 4 * D_pad * bpe_x + 4 * D_pad
        return (budget - fixed) // per_row

    # If even the minimum row tile doesn't fit at this tile_h, shrink tile_h.
    while tile_h > 128 and max_tm(tile_h) < sub:
        tile_h //= 2
    tm_vmem = max(int(max_tm(tile_h)), sub)
    tile_m_cap = min(tile_m_cap, tm_vmem)
    tile_m_cap = max(sub, (tile_m_cap // sub) * sub)

    # Minimize M-padding waste: smallest k with tile_m <= cap.
    k = max(1, _cdiv(M, tile_m_cap))
    if small_vmem and k == 1 and M > sub:
        # Keep both v7x TensorCores busy: at least two row tiles.
        k = 2
    tile_m = min(tile_m_cap, max(sub, _round_up(_cdiv(M, k), sub)))

    return tile_m, tile_h, vmem_needed(tile_m, tile_h), vmem_cap


def ffn_pallas(x, w1, b1, w2, b2, *, tile_m=None, tile_h=None):
    orig_shape = x.shape
    D = orig_shape[-1]
    x2 = x.reshape(-1, D)
    M = x2.shape[0]
    H = w1.shape[1]
    assert w1.shape == (D, H) and w2.shape == (H, D)

    # ---- lane-dense / MXU-aligned padding ---------------------------------
    D_pad = _round_up(D, 128)
    H_pad = _round_up(H, 128)

    tm, th, needed, vmem_cap = _select_tiles(M, D_pad, H_pad, x.dtype, w1.dtype)
    if tile_m is not None:
        tm = tile_m
    if tile_h is not None:
        th = min(tile_h, H_pad)
    assert H_pad % th == 0
    M_pad = _round_up(M, tm)

    # Only materialize padded copies when the shapes actually need it.
    # TODO(synk): for repeated calls, pre-pad / lay out the weights once at
    # init instead of per call (the per-call copies cost 2*D*H*bpe HBM traffic).
    if (M_pad, D_pad) != (M, D):
        xp = jnp.pad(x2, ((0, M_pad - M), (0, D_pad - D)))
    else:
        xp = x2
    if (D_pad, H_pad) != (D, H):
        w1p = jnp.pad(w1, ((0, D_pad - D), (0, H_pad - H)))
        w2p = jnp.pad(w2, ((0, H_pad - H), (0, D_pad - D)))
        b1p = jnp.pad(b1.reshape(1, H), ((0, 0), (0, H_pad - H)))
        b2p = jnp.pad(b2.reshape(1, D), ((0, 0), (0, D_pad - D)))
    else:
        w1p, w2p = w1, w2
        b1p, b2p = b1.reshape(1, H), b2.reshape(1, D)

    grid = (M_pad // tm, H_pad // th)

    # ---- VMEM limit gated by the actual chip capacity ---------------------
    vmem_limit = int(min(max(int(needed * 1.3) + (2 << 20), 32 << 20),
                         int(vmem_cap * 0.90)))

    bpe_x = jnp.dtype(x.dtype).itemsize
    bpe_w = jnp.dtype(w1.dtype).itemsize
    bpe_b = jnp.dtype(b1.dtype).itemsize
    cost = pl.CostEstimate(
        flops=int(4 * M_pad * D_pad * H_pad),            # two matmuls
        transcendentals=0,
        bytes_accessed=int(
            xp.size * bpe_x + M_pad * D_pad * bpe_x      # x in, out
            + grid[0] * (w1p.size + w2p.size) * bpe_w    # weights per row tile
            + grid[0] * (b1p.size + b2p.size) * bpe_b
        ),
    )

    out = pl.pallas_call(
        ffn_kernel,
        out_shape=jax.ShapeDtypeStruct((M_pad, D_pad), x.dtype),
        grid_spec=pltpu.PrefetchScalarGridSpec(
            num_scalar_prefetch=0,
            grid=grid,
            in_specs=[
                pl.BlockSpec((tm, D_pad), lambda i, h: (i, 0)),   # x row-tile
                pl.BlockSpec((D_pad, th), lambda i, h: (0, h)),   # w1 H-slice
                pl.BlockSpec((1, th), lambda i, h: (0, h)),       # b1 H-slice
                pl.BlockSpec((th, D_pad), lambda i, h: (h, 0)),   # w2 H-slice
                pl.BlockSpec((1, D_pad), lambda i, h: (0, 0)),    # b2
            ],
            out_specs=pl.BlockSpec((tm, D_pad), lambda i, h: (i, 0)),
            scratch_shapes=[pltpu.VMEM((tm, D_pad), jnp.float32)],
        ),
        compiler_params=pltpu.CompilerParams(
            dimension_semantics=("parallel", "arbitrary"),
            vmem_limit_bytes=vmem_limit,
        ),
        cost_estimate=cost,
    )(xp, w1p, b1p, w2p, b2p)

    return out[:M, :D].reshape(orig_shape)


def xavier_uniform(key, fan_out, fan_in, dtype=jnp.float32):
    # matches torch.nn.init.xavier_uniform_ for a Linear weight [fan_out, fan_in]
    limit = (6.0 / (fan_in + fan_out)) ** 0.5
    return jax.random.uniform(key, (fan_out, fan_in), dtype, minval=-limit, maxval=limit)


def linear_bias_init(key, fan_in, fan_out, dtype=jnp.float32):
    # torch Linear default bias init: U(-1/sqrt(fan_in), 1/sqrt(fan_in))
    bound = 1.0 / (fan_in ** 0.5)
    return jax.random.uniform(key, (fan_out,), dtype, minval=-bound, maxval=bound)


if __name__ == "__main__":
    input_features = 32
    hidden_size = 64
    batch = 8

    key = jax.random.PRNGKey(0)
    kx, kw1, kb1, kw2, kb2 = jax.random.split(key, 5)

    x = jax.random.normal(kx, (batch, input_features), jnp.float32)

    # torch weights are [out, in]; transpose so the kernel computes x @ w
    w1_t = xavier_uniform(kw1, hidden_size, input_features)       # fc1.weight [H, D]
    b1 = linear_bias_init(kb1, input_features, hidden_size)       # fc1.bias   [H]
    w2_t = xavier_uniform(kw2, input_features, hidden_size)       # fc2.weight [D, H]
    b2 = linear_bias_init(kb2, hidden_size, input_features)       # fc2.bias   [D]

    w1 = w1_t.T                      # [D, H]
    w2 = w2_t.T                      # [H, D]

    out = ffn_pallas(x, w1, b1, w2, b2)
    out = jax.block_until_ready(out)

    # pure-JAX reference check
    ref = jnp.maximum(x @ w1 + b1, 0.0) @ w2 + b2
    assert jnp.allclose(out, ref, atol=1e-5, rtol=1e-5), "mismatch vs reference"

    print("KERNEL_OK")
</pallas_src>

<mosaic_0001>
module attributes {stable_mosaic.version = 11 : i64} {
  func.func @ffn_kernel(%arg0: i32, %arg1: i32, %arg2: memref<8x128xf32, #tpu.memory_space<vmem>>, %arg3: memref<128x128xf32, #tpu.memory_space<vmem>>, %arg4: memref<1x128xf32, #tpu.memory_space<vmem>>, %arg5: memref<128x128xf32, #tpu.memory_space<vmem>>, %arg6: memref<1x128xf32, #tpu.memory_space<vmem>>, %arg7: memref<8x128xf32, #tpu.memory_space<vmem>>, %arg8: memref<8x128xf32, #tpu.memory_space<vmem>>) attributes {dimension_semantics = [#tpu.dimension_semantics<parallel>, #tpu.dimension_semantics<arbitrary>], iteration_bounds = array<i64: 1, 1>, scalar_prefetch = 0 : i64, scratch_operands = 1 : i64, tpu.core_type = #tpu.core_type<tc>, window_params = [{transform_indices = @transform_0, window_bounds = array<i64: 8, 128>}, {transform_indices = @transform_1, window_bounds = array<i64: 128, 128>}, {transform_indices = @transform_2, window_bounds = array<i64: 1, 128>}, {transform_indices = @transform_3, window_bounds = array<i64: 128, 128>}, {pipeline_mode = #tpu.pipeline_mode<synchronous>, transform_indices = @transform_4, window_bounds = array<i64: 1, 128>}, {transform_indices = @transform_5, window_bounds = array<i64: 8, 128>}]} {
    %c0_i32 = arith.constant 0 : i32
    %0 = arith.cmpi eq, %arg1, %c0_i32 : i32
    %1 = arith.extui %0 : i1 to i32
    %c0_i32_0 = arith.constant 0 : i32
    %2 = arith.cmpi ne, %1, %c0_i32_0 : i32
    scf.if %2 {
      %cst_16 = arith.constant 0.000000e+00 : f32
      %19 = vector.broadcast %cst_16 : f32 to vector<8x128xf32>
      %c0_17 = arith.constant 0 : index
      %c0_18 = arith.constant 0 : index
      %20 = vector.load %arg8[%c0_17, %c0_18] : memref<8x128xf32, #tpu.memory_space<vmem>>, vector<8x128xf32>
      tpu.vector_store %arg8[%c0_17, %c0_18], %19 {strides = array<i32>} : memref<8x128xf32, #tpu.memory_space<vmem>>, vector<8x128xf32>,
    } else {
    }
    %c0 = arith.constant 0 : index
    %c0_1 = arith.constant 0 : index
    %3 = vector.load %arg2[%c0, %c0_1] : memref<8x128xf32, #tpu.memory_space<vmem>>, vector<8x128xf32>
    %c0_2 = arith.constant 0 : index
    %c0_3 = arith.constant 0 : index
    %4 = vector.load %arg3[%c0_2, %c0_3] : memref<128x128xf32, #tpu.memory_space<vmem>>, vector<128x128xf32>
    %cst = arith.constant dense<0.000000e+00> : vector<8x128xf32>
    %5 = tpu.matmul %3, %4, %cst {dimension_numbers = #tpu.dot_dimension_numbers<[1], [0], [0], [1], [0, 0, 1, 1], [], []>} : vector<8x128xf32>, vector<128x128xf32>, vector<8x128xf32> -> vector<8x128xf32>
    %c0_4 = arith.constant 0 : index
    %c0_5 = arith.constant 0 : index
    %6 = vector.load %arg4[%c0_4, %c0_5] : memref<1x128xf32, #tpu.memory_space<vmem>>, vector<1x128xf32>
    %7 = vector.broadcast %6 : vector<1x128xf32> to vector<8x128xf32>
    %8 = arith.addf %5, %7 : vector<8x128xf32>
    %cst_6 = arith.constant 0.000000e+00 : f32
    %9 = vector.broadcast %cst_6 : f32 to vector<8x128xf32>
    %10 = arith.maximumf %8, %9 : vector<8x128xf32>
    %c0_7 = arith.constant 0 : index
    %c0_8 = arith.constant 0 : index
    %11 = vector.load %arg8[%c0_7, %c0_8] : memref<8x128xf32, #tpu.memory_space<vmem>>, vector<8x128xf32>
    %c0_9 = arith.constant 0 : index
    %c0_10 = arith.constant 0 : index
    %12 = vector.load %arg5[%c0_9, %c0_10] : memref<128x128xf32, #tpu.memory_space<vmem>>, vector<128x128xf32>
    %cst_11 = arith.constant dense<0.000000e+00> : vector<8x128xf32>
    %13 = tpu.matmul %10, %12, %cst_11 {dimension_numbers = #tpu.dot_dimension_numbers<[1], [0], [0], [1], [0, 0, 1, 1], [], []>} : vector<8x128xf32>, vector<128x128xf32>, vector<8x128xf32> -> vector<8x128xf32>
    %14 = arith.addf %11, %13 : vector<8x128xf32>
    %c0_12 = arith.constant 0 : index
    %c0_13 = arith.constant 0 : index
    %15 = vector.load %arg8[%c0_12, %c0_13] : memref<8x128xf32, #tpu.memory_space<vmem>>, vector<8x128xf32>
    tpu.vector_store %arg8[%c0_12, %c0_13], %14 {strides = array<i32>} : memref<8x128xf32, #tpu.memory_space<vmem>>, vector<8x128xf32>,
    %c0_i32_14 = arith.constant 0 : i32
    %16 = arith.cmpi eq, %arg1, %c0_i32_14 : i32
    %17 = arith.extui %16 : i1 to i32
    %c0_i32_15 = arith.constant 0 : i32
    %18 = arith.cmpi ne, %17, %c0_i32_15 : i32
    scf.if %18 {
      %c0_16 = arith.constant 0 : index
      %c0_17 = arith.constant 0 : index
      %19 = vector.load %arg8[%c0_16, %c0_17] : memref<8x128xf32, #tpu.memory_space<vmem>>, vector<8x128xf32>
      %c0_18 = arith.constant 0 : index
      %c0_19 = arith.constant 0 : index
      %20 = vector.load %arg6[%c0_18, %c0_19] : memref<1x128xf32, #tpu.memory_space<vmem>>, vector<1x128xf32>
      %21 = vector.broadcast %20 : vector<1x128xf32> to vector<8x128xf32>
      %22 = arith.addf %19, %21 : vector<8x128xf32>
      %c0_20 = arith.constant 0 : index
      %c0_21 = arith.constant 0 : index
      %23 = vector.load %arg7[%c0_20, %c0_21] : memref<8x128xf32, #tpu.memory_space<vmem>>, vector<8x128xf32>
      tpu.vector_store %arg7[%c0_20, %c0_21], %22 {strides = array<i32>} : memref<8x128xf32, #tpu.memory_space<vmem>>, vector<8x128xf32>,
    } else {
    }
    return
  }
  func.func @transform_0(%arg0: i32, %arg1: i32) -> (i32, i32) {
    %c0_i32 = arith.constant 0 : i32
    %c0_i32_0 = arith.constant 0 : i32
    return %arg0, %c0_i32 : i32, i32
  }
  func.func @transform_1(%arg0: i32, %arg1: i32) -> (i32, i32) {
    %c0_i32 = arith.constant 0 : i32
    %c0_i32_0 = arith.constant 0 : i32
    return %c0_i32, %arg1 : i32, i32
  }
  func.func @transform_2(%arg0: i32, %arg1: i32) -> (i32, i32) {
    %c0_i32 = arith.constant 0 : i32
    %c0_i32_0 = arith.constant 0 : i32
    return %c0_i32, %arg1 : i32, i32
  }
  func.func @transform_3(%arg0: i32, %arg1: i32) -> (i32, i32) {
    %c0_i32 = arith.constant 0 : i32
    %c0_i32_0 = arith.constant 0 : i32
    return %arg1, %c0_i32 : i32, i32
  }
  func.func @transform_4(%arg0: i32, %arg1: i32) -> (i32, i32) {
    %c0_i32 = arith.constant 0 : i32
    %c0_i32_0 = arith.constant 0 : i32
    %c0_i32_1 = arith.constant 0 : i32
    return %c0_i32, %c0_i32_0 : i32, i32
  }
  func.func @transform_5(%arg0: i32, %arg1: i32) -> (i32, i32) {
    %c0_i32 = arith.constant 0 : i32
    %c0_i32_0 = arith.constant 0 : i32
    return %arg0, %c0_i32 : i32, i32
  }
}

</mosaic_0001>

<bundles_post_ra>
// kernel: tpu_custom_call.1
= control target key start
LH: loop header
LB: loop body
LE: loop exit
PB: predicated region body
PF: predicated region fallthrough
CT: control target
= control target key end

     0   :  { %10 = vsyncpa [#allocation4], 0  ;;  %s344_s0 = inlined_call_operand.hbm [shape: f32[8,128], index: 0, kind: input, shape index: {}]   ;;  %s345_s1 = inlined_call_operand.hbm [shape: f32[128,128], index: 1, kind: input, shape index: {}]   ;;  %s346_s2 = inlined_call_operand.vmem [shape: f32[1,128], index: 2, kind: input, shape index: {}]   ;;  %s347_s3 = inlined_call_operand.hbm [shape: f32[128,128], index: 3, kind: input, shape index: {}]   ;;  %s348_s4 = inlined_call_operand.vmem [shape: f32[1,128], index: 4, kind: input, shape index: {}]   ;;  %s349_s5 = inlined_call_operand.hbm [shape: f32[8,128], index: 5, kind: output, shape index: {}]  }
   0x1   :  { %11 = vsyncpa [#allocation7], 0  ;;  %s28_s20 = sshll.u32 %s345_s1, 4  ;;  %s29_s20 = int_to_ptr.hbm [resolvable:$true] %s28_s20 }
   0x2   :  { %12 = vsyncpa [#allocation5], 0  ;;  %s290_s21 = smov [#allocation6]   ;;  %s18_s25 = sshll.u32 %s344_s0, 4  ;;  %s19_s25 = int_to_ptr.hbm [resolvable:$true] %s18_s25 }
   0x3   :  { %s30_s22 = sshll.u32 %s290_s21, 4  ;;  %s291_s26 = smov 128   ;;  %s31_s22 = int_to_ptr.vmem [resolvable:$true] %s30_s22 }
   0x4   :  { %s292_s27 = smov 8   ;;  %s293_s28 = smov [#allocation3]  }
   0x5   :  { %36 = dma.hbm_to_vmem [thread:$0]  %s29_s20, 2048, %s31_s22, [#allocation7], %s291_s26, %s291_s26, %s292_s27  }
   0x6   :  { %s20_s29 = sshll.u32 %s293_s28, 4  ;;  %s43_s7 = sshll.u32 %s347_s3, 4  ;;  %s21_s29 = int_to_ptr.vmem [resolvable:$true] %s20_s29  ;;  %s44_s7 = int_to_ptr.hbm [resolvable:$true] %s43_s7 }
   0x7   :  { %23 = dma.hbm_to_vmem [thread:$0]  %s19_s25, 128, %s21_s29, [#allocation4]  }
   0x8   :  { %s294_s1 = smov [#allocation8]  }
   0x9   :  { %s45_s8 = sshll.u32 %s294_s1, 4  ;;  %s46_s8 = int_to_ptr.vmem [resolvable:$true] %s45_s8 }
   0xa   :  { %51 = dma.hbm_to_vmem [thread:$0]  %s44_s7, 2048, %s46_s8, [#allocation7], %s291_s26, %s291_s26, %s292_s27  }
   0xb   :  { %284 = dma.done.wait [#allocation4], 128  }
   0xc   :  { %285 = vsyncadd [#allocation4], 4294967168 }
   0xd   :  { %286 = dma.done.wait [#allocation7], 4096  }
   0xe   :  { %287 = vsyncadd [#allocation7], 4294963200  ;;  %v87_v0 = vld [vmem:[#allocation6 + $0x78] sm:$0xff]  ;;  %v86_v1 = vld [vmem:[#allocation6 + $0x70] sm:$0xff]  ;;  %s295_s11 = smov [#allocation9]   ;;  %s169_s15 = sshll.u32 %s349_s5, 4  ;;  %s170_s15 = int_to_ptr.hbm [resolvable:$true] %s169_s15 }
   0xf   :  { %92 = vmatpush.msra.mxu0 %v87_v0  ;;  %v85_v2 = vld [vmem:[#allocation6 + $0x68] sm:$0xff]  ;;  %v84_v3 = vld [vmem:[#allocation6 + $0x60] sm:$0xff]  ;;  %v129_v4 = vld [vmem:[#allocation8 + $0x78] sm:$0xff]  ;;  %s167_s12 = sshll.u32 %s295_s11, 4  ;;  %s168_s12 = int_to_ptr.vmem [resolvable:$true] %s167_s12 }
  0x10   :  { %v83_v5 = vld [vmem:[#allocation6 + $0x58] sm:$0xff]  ;;  %130 = vmatpush.msra.mxu1 %v129_v4  ;;  %v128_v6 = vld [vmem:[#allocation8 + $0x70] sm:$0xff]  ;;  %v127_v7 = vld [vmem:[#allocation8 + $0x68] sm:$0xff] }
  0x11   :  { %93 = vmatpush.msra.mxu0 %v86_v1  ;;  %v82_v8 = vld [vmem:[#allocation6 + $0x50] sm:$0xff]  ;;  %v126_v9 = vld [vmem:[#allocation8 + $0x60] sm:$0xff]  ;;  %v81_v10 = vld [vmem:[#allocation6 + $0x48] sm:$0xff] }
  0x12   :  { %131 = vmatpush.msra.mxu1 %v128_v6  ;;  %v125_v11 = vld [vmem:[#allocation8 + $0x58] sm:$0xff]  ;;  %v80_v12 = vld [vmem:[#allocation6 + $0x40] sm:$0xff]  ;;  %v124_v13 = vld [vmem:[#allocation8 + $0x50] sm:$0xff] }
  0x13   :  { %94 = vmatpush.msra.mxu0 %v85_v2  ;;  %v79_v14 = vld [vmem:[#allocation6 + $0x38] sm:$0xff]  ;;  %v123_v15 = vld [vmem:[#allocation8 + $0x48] sm:$0xff]  ;;  %v78_v16 = vld [vmem:[#allocation6 + $0x30] sm:$0xff] }
  0x14   :  { %132 = vmatpush.msra.mxu1 %v127_v7  ;;  %v122_v17 = vld [vmem:[#allocation8 + $0x40] sm:$0xff]  ;;  %v77_v18 = vld [vmem:[#allocation6 + $0x28] sm:$0xff]  ;;  %v121_v19 = vld [vmem:[#allocation8 + $0x38] sm:$0xff] }
  0x15   :  { %95 = vmatpush.msra.mxu0 %v84_v3  ;;  %v76_v20 = vld [vmem:[#allocation6 + $0x20] sm:$0xff]  ;;  %v120_v21 = vld [vmem:[#allocation8 + $0x30] sm:$0xff]  ;;  %v75_v22 = vld [vmem:[#allocation6 + $0x18] sm:$0xff] }
  0x16   :  { %133 = vmatpush.msra.mxu1 %v126_v9  ;;  %v119_v23 = vld [vmem:[#allocation8 + $0x28] sm:$0xff]  ;;  %v74_v24 = vld [vmem:[#allocation6 + $0x10] sm:$0xff]  ;;  %v118_v25 = vld [vmem:[#allocation8 + $0x20] sm:$0xff] }
  0x17   :  { %96 = vmatpush.msra.mxu0 %v83_v5  ;;  %v73_v26 = vld [vmem:[#allocation6 + $0x8] sm:$0xff]  ;;  %v117_v27 = vld [vmem:[#allocation8 + $0x18] sm:$0xff]  ;;  %v72_v28 = vld [vmem:[#allocation6] sm:$0xff] }
  0x18   :  { %134 = vmatpush.msra.mxu1 %v125_v11  ;;  %v71_v29 = vld [vmem:[#allocation3] sm:$0xff]  ;;  %v116_v30 = vld [vmem:[#allocation8 + $0x10] sm:$0xff]  ;;  %v115_v31 = vld [vmem:[#allocation8 + $0x8] sm:$0xff] }
  0x19   :  { %97 = vmatpush.msra.mxu0 %v82_v8  ;;  %v114_v32 = vld [vmem:[#allocation8] sm:$0xff]  ;;  %v186_v33 = vld [vmem:[%s346_s2] ss:$0 sm:$0xff] }
  0x1a   :  { %135 = vmatpush.msra.mxu1 %v124_v13  ;;  %v187_v37 = vld [vmem:[%s348_s4] ss:$0 sm:$0xff] }
  0x1b   :  { %98 = vmatpush.msra.mxu0 %v81_v10 }
  0x1c   :  { %136 = vmatpush.msra.mxu1 %v123_v15 }
  0x1d   :  { %99 = vmatpush.msra.mxu0 %v80_v12 }
  0x1e   :  { %137 = vmatpush.msra.mxu1 %v122_v17 }
  0x1f   :  { %100 = vmatpush.msra.mxu0 %v79_v14 }
  0x20   :  { %138 = vmatpush.msra.mxu1 %v121_v19 }
  0x21   :  { %101 = vmatpush.msra.mxu0 %v78_v16 }
  0x22   :  { %139 = vmatpush.msra.mxu1 %v120_v21 }
  0x23   :  { %102 = vmatpush.msra.mxu0 %v77_v18 }
  0x24   :  { %140 = vmatpush.msra.mxu1 %v119_v23 }
  0x25   :  { %103 = vmatpush.msra.mxu0 %v76_v20 }
  0x26   :  { %141 = vmatpush.msra.mxu1 %v118_v25 }
  0x27   :  { %104 = vmatpush.msra.mxu0 %v75_v22 }
  0x28   :  { %142 = vmatpush.msra.mxu1 %v117_v27 }
  0x29   :  { %105 = vmatpush.msra.mxu0 %v74_v24 }
  0x2a   :  { %143 = vmatpush.msra.mxu1 %v116_v30 }
  0x2b   :  { %106 = vmatpush.msra.mxu0 %v73_v26 }
  0x2c   :  { %144 = vmatpush.msra.mxu1 %v115_v31 }
  0x2d   :  { %107 = vmatpush.msra.mxu0 %v72_v28 }
  0x2e   :  { %108 = vmatmul.f32.vlgmr.msra.gmra.mxu0 %v71_v29  ;;  %145 = vmatpush.msra.mxu1 %v114_v32 }
  0xab   :  { %v109_v34 = vpop.f32.mrf.mxu0 }
  0xac   :  { %v110_v35 = vadd.f32 %v186_v33, %v109_v34 }
  0xae   :  { %v112_v36 = vmax.f32 %v110_v35, 0.0 }
  0xb0   :  { %146 = vmatmul.f32.vlgmr.msra.gmra.mxu1 %v112_v36 }
 0x12d   :  { %v147_v38 = vpop.f32.mrf.mxu1 }
 0x12e   :  { %v160_v39 = vadd.f32 %v187_v37, %v147_v38 }
 0x130   :  { %161 = vst [vmem:[#allocation9] sm:$0xff] %v160_v39 }
 0x131   :  { %172 = dma.vmem_to_hbm [thread:$0]  %s168_s12, 128, %s170_s15, [#allocation5]  }
 0x132   :  { %288 = dma.done.wait [#allocation5], 128  }
 0x133   :  { %289 = vsyncadd [#allocation5], 4294967168 }
 0x134   :  { %177 = vsyncpa [#allocation4], 1 }
 0x135   :  { %178 = vsyncpa [#allocation7], 1 }
 0x136   :  { %179 = vsyncpa [#allocation5], 1 }

</bundles_post_ra>
